<compile_context>
chip_gen: v6e
topology: v6e:2x2x1
jax: 0.10.0
libtpu: 0.0.40
codegen_flags: <defaults>
</compile_context>

<pallas_src>
import numpy as np
import jax
import jax.numpy as jnp
from jax.experimental import pallas as pl
from jax.experimental.pallas import tpu as pltpu


def _build_e2h_params(edge_info, num_points, num_edges):
    """Deterministic construction of the e2h weight matrix and bias (numpy)."""
    e2h = np.zeros([num_points, num_edges], dtype=np.float32)
    for edge_id, (is_closed, indices) in enumerate(edge_info):
        for point_id in indices:
            e2h[point_id, edge_id] = 1.0
    # bias[p] = 1.0 iff point p belongs to no edge (row-sum < 0.5), else 0.0
    bias = (e2h @ np.ones([num_edges], dtype=np.float32) < 0.5).astype(np.float32)
    return e2h, bias


def _e2h_kernel(w_ref, b_ref, x_ref, o_ref):
    # w_ref: (P, E)  resident 1x1-conv weight
    # b_ref: (P, 1)  resident bias column
    # x_ref: (E, T)  tile of flattened spatial pixels (T lane-dense)
    # o_ref: (P, T)  lane-dense output tile (already NCHW layout)
    acc = jnp.dot(w_ref[...], x_ref[...], preferred_element_type=jnp.float32)
    o_ref[...] = (acc + b_ref[...]).astype(o_ref.dtype)


def e2h_transform(edgemaps, weight, bias, *, tile_hw=8192):
    """edgemaps: (N, E, H, W) f32 NCHW (like the PyTorch module).

    weight: (P, E) f32 (1x1 conv weight with trailing 1x1 dims squeezed)
    bias:   (P,)   f32
    returns (N, P, H, W) f32.
    """
    N, E, H, W = edgemaps.shape
    P = weight.shape[0]
    HW = H * W

    x3 = edgemaps.reshape(N, E, HW)   # pure view of NCHW: no HBM transpose pass
    b2 = bias.reshape(P, 1)

    lane = 128
    hw_ceil = ((HW + lane - 1) // lane) * lane
    t = max(lane, min(int(tile_hw), hw_ceil))
    t = ((t + lane - 1) // lane) * lane          # lane-dense tile (multiple of 128)

    grid = (N, pl.cdiv(HW, t))                   # ragged last block handled by Pallas

    out3 = pl.pallas_call(
        _e2h_kernel,
        out_shape=jax.ShapeDtypeStruct((N, P, HW), jnp.float32),
        grid_spec=pltpu.PrefetchScalarGridSpec(
            num_scalar_prefetch=0,
            grid=grid,
            in_specs=[
                pl.BlockSpec((P, E), lambda n, j: (0, 0)),           # weight (resident)
                pl.BlockSpec((P, 1), lambda n, j: (0, 0)),           # bias   (resident)
                pl.BlockSpec((None, E, t), lambda n, j: (n, 0, j)),  # x tile
            ],
            out_specs=pl.BlockSpec((None, P, t), lambda n, j: (n, 0, j)),
        ),
        compiler_params=pltpu.CompilerParams(
            dimension_semantics=("parallel", "parallel"),
        ),
    )(weight, b2, x3)

    return out3.reshape(N, P, H, W)


def _reference(edgemaps, weight, bias):
    # Pure-JAX reference: out[n,p,h,w] = sum_e W[p,e]*x[n,e,h,w] + b[p]
    out = jnp.einsum("nehw,pe->nphw", edgemaps, weight)
    return out + bias[None, :, None, None]


if __name__ == "__main__":
    # Small synthetic configuration (consistent with the module's __init__):
    num_points = 16
    num_edges = 8
    # edge_info: list of (is_closed, point_indices); points 12..15 belong to no
    # edge so the bias term is exercised (bias 1 for those rows).
    edge_info = [
        (False, [0, 1, 2]),
        (True,  [2, 3, 4]),
        (False, [4, 5]),
        (True,  [5, 6, 7]),
        (False, [7, 8, 9]),
        (True,  [9, 10]),
        (False, [10, 11]),
        (True,  [11, 0]),
    ]

    weight_np, bias_np = _build_e2h_params(edge_info, num_points, num_edges)
    weight = jnp.asarray(weight_np)   # (P, E)
    bias = jnp.asarray(bias_np)       # (P,)

    N, H, W = 2, 16, 16
    key = jax.random.PRNGKey(0)
    edgemaps = jax.random.normal(key, (N, num_edges, H, W), dtype=jnp.float32)

    ref = _reference(edgemaps, weight, bias)

    # Default (large) tile: single lane-dense block per image.
    out = e2h_transform(edgemaps, weight, bias)
    out = jax.block_until_ready(out)
    np.testing.assert_allclose(np.asarray(out), np.asarray(ref), rtol=1e-5, atol=1e-5)
    assert out.shape == (N, num_points, H, W)

    # Small tile: exercises the multi-tile grid along the H*W axis.
    out_small = e2h_transform(edgemaps, weight, bias, tile_hw=128)
    out_small = jax.block_until_ready(out_small)
    np.testing.assert_allclose(np.asarray(out_small), np.asarray(ref), rtol=1e-5, atol=1e-5)

    print("KERNEL_OK")
</pallas_src>

<mosaic_0001>
module attributes {stable_mosaic.version = 11 : i64} {
  func.func @_e2h_kernel(%arg0: i32, %arg1: i32, %arg2: memref<16x8xf32, #tpu.memory_space<vmem>>, %arg3: memref<16x1xf32, #tpu.memory_space<vmem>>, %arg4: memref<1x8x256xf32, #tpu.memory_space<vmem>>, %arg5: memref<1x16x256xf32, #tpu.memory_space<vmem>>) attributes {dimension_semantics = [#tpu.dimension_semantics<parallel>, #tpu.dimension_semantics<parallel>], iteration_bounds = array<i64: 2, 1>, scalar_prefetch = 0 : i64, scratch_operands = 0 : i64, tpu.core_type = #tpu.core_type<tc>, window_params = [{pipeline_mode = #tpu.pipeline_mode<synchronous>, transform_indices = @transform_0, window_bounds = array<i64: 16, 8>}, {pipeline_mode = #tpu.pipeline_mode<synchronous>, transform_indices = @transform_1, window_bounds = array<i64: 16, 1>}, {transform_indices = @transform_2, window_bounds = array<i64: 1, 8, 256>}, {transform_indices = @transform_3, window_bounds = array<i64: 1, 16, 256>}]} {
    %c0 = arith.constant 0 : index
    %c0_0 = arith.constant 0 : index
    %0 = vector.load %arg2[%c0, %c0_0] : memref<16x8xf32, #tpu.memory_space<vmem>>, vector<16x8xf32>
    %c0_1 = arith.constant 0 : index
    %c0_2 = arith.constant 0 : index
    %c0_3 = arith.constant 0 : index
    %1 = vector.load %arg4[%c0_1, %c0_2, %c0_3] : memref<1x8x256xf32, #tpu.memory_space<vmem>>, vector<1x8x256xf32>
    %2 = vector.shape_cast %1 : vector<1x8x256xf32> to vector<8x256xf32>
    %cst = arith.constant dense<0.000000e+00> : vector<16x256xf32>
    %3 = tpu.matmul %0, %2, %cst {dimension_numbers = #tpu.dot_dimension_numbers<[1], [0], [0], [1], [0, 0, 1, 1], [], []>} : vector<16x8xf32>, vector<8x256xf32>, vector<16x256xf32> -> vector<16x256xf32>
    %c0_4 = arith.constant 0 : index
    %c0_5 = arith.constant 0 : index
    %4 = vector.load %arg3[%c0_4, %c0_5] : memref<16x1xf32, #tpu.memory_space<vmem>>, vector<16x1xf32>
    %5 = vector.broadcast %4 : vector<16x1xf32> to vector<16x256xf32>
    %6 = arith.addf %3, %5 : vector<16x256xf32>
    %c0_6 = arith.constant 0 : index
    %c0_7 = arith.constant 0 : index
    %c0_8 = arith.constant 0 : index
    %7 = vector.load %arg5[%c0_6, %c0_7, %c0_8] : memref<1x16x256xf32, #tpu.memory_space<vmem>>, vector<1x16x256xf32>
    %8 = vector.shape_cast %7 : vector<1x16x256xf32> to vector<16x256xf32>
    %9 = vector.shape_cast %6 : vector<16x256xf32> to vector<1x16x256xf32>
    tpu.vector_store %arg5[%c0_6, %c0_7, %c0_8], %9 {strides = array<i32>} : memref<1x16x256xf32, #tpu.memory_space<vmem>>, vector<1x16x256xf32>,
    return
  }
  func.func @transform_0(%arg0: i32, %arg1: i32) -> (i32, i32) {
    %c0_i32 = arith.constant 0 : i32
    %c0_i32_0 = arith.constant 0 : i32
    %c0_i32_1 = arith.constant 0 : i32
    return %c0_i32, %c0_i32_0 : i32, i32
  }
  func.func @transform_1(%arg0: i32, %arg1: i32) -> (i32, i32) {
    %c0_i32 = arith.constant 0 : i32
    %c0_i32_0 = arith.constant 0 : i32
    %c0_i32_1 = arith.constant 0 : i32
    return %c0_i32, %c0_i32_0 : i32, i32
  }
  func.func @transform_2(%arg0: i32, %arg1: i32) -> (i32, i32, i32) {
    %c0_i32 = arith.constant 0 : i32
    %c0_i32_0 = arith.constant 0 : i32
    return %arg0, %c0_i32, %arg1 : i32, i32, i32
  }
  func.func @transform_3(%arg0: i32, %arg1: i32) -> (i32, i32, i32) {
    %c0_i32 = arith.constant 0 : i32
    %c0_i32_0 = arith.constant 0 : i32
    return %arg0, %c0_i32, %arg1 : i32, i32, i32
  }
}

</mosaic_0001>

<bundles_post_ra>
// kernel: tpu_custom_call.1
= control target key start
LH: loop header
LB: loop body
LE: loop exit
PB: predicated region body
PF: predicated region fallthrough
CT: control target
= control target key end

     0   :  { %8 = vsyncpa [#allocation3], 0  ;;  %s707_s0 = inlined_call_operand.vmem [shape: f32[16,8], index: 0, kind: input, shape index: {}]   ;;  %s708_s1 = inlined_call_operand.vmem [shape: f32[16,1], index: 1, kind: input, shape index: {}]   ;;  %s709_s2 = inlined_call_operand.vmem [shape: f32[2,8,256], index: 2, kind: input, shape index: {}]   ;;  %s710_s3 = inlined_call_operand.hbm [shape: f32[2,16,256], index: 3, kind: output, shape index: {}]  }
   0x1   :  { %10 = vsyncpa [#allocation3 + $0x1], 0  ;;  %s581_s12 = smov 0   ;;  %s583_s13 = smov 0  }
   0x2   :  { %s585_s14 = smov 0   ;;  %s587_s15 = smov 0  }
   0x3   :  { %s589_s16 = smov 0   ;;  %s591_s17 = smov 0  }
   0x4 LB: > { %s399_s18 = sadd.s32 4294967295, %s554_s17   ;;  %s400_s19 = sadd.s32 4294967294, %s554_s17   ;;  %s554_s17 = sphi %s591_s17, %s16_s17   ;;  %s550_s16 = sphi %s589_s16, %s717_s16   ;;  %s546_s15 = sphi %s587_s15, %s716_s15   ;;  %s542_s14 = sphi %s585_s14, %s715_s14   ;;  %s538_s13 = sphi %s583_s13, %s714_s13   ;;  %s534_s12 = sphi %s581_s12, %s713_s12  }
   0x5   : > { %s28_s20 = sadd.s32 1, %s550_s16  ;;  %s107_s21 = sadd.s32 1, %s542_s14 }
   0x6   : > { %p30_p0 = scmp.ge.s32.totalorder %s28_s20, 2  ;;  %p117_p1 = scmp.ne.s32.totalorder %s542_s14, %s538_s13 }
   0x7   : > { %p118_p2 = scmp.eq.s32.totalorder %s399_s18, 1  ;;  %p123_p3 = scmp.ne.s32.totalorder %s538_s13, %s534_s12 }
   0x8   : > { %s719_s20 = smov (%p30_p0, %s28_s20), 0  ;;  %p124_p5 = scmp.eq.s32.totalorder %s400_s19, 1 }
   0x9   : > { %p621_p4 = por %p118_p2, %p117_p1  ;;  %s102_s23 = ssub.s32 %s550_s16, %s719_s20 }
   0xa   : > { %p403_p6 = scmp.ge.s32.totalorder %s554_s17, 1  ;;  %p105_p7 = scmp.eq.s32.totalorder %s102_s23, 0 }
   0xb   : > { %p628_p8 = por %p124_p5, %p123_p3  ;;  %p161_p9 = scmp.lt.s32.totalorder %s554_s17, 3 }
   0xc   : > { %s634_s25 = scalar_select %p105_p7, %s542_s14, %s107_s21  }
   0xd   : > { %p162_p10 = pnand %p403_p6, %p161_p9 }
   0xe   : > { %p190_p11 = scmp.lt.s32.totalorder (!%p162_p10), %s546_s15, 1  ;;  %s186_s18 = sand.u32 (!%p162_p10), 1, %s538_s13  }
   0xf   : > { %165 = sbr.rel (%p162_p10) target bundleno = 238 (0xee), region = 32  ;;  %s404_s19 = sshll.u32 (!%p162_p10), %s186_s18, 5 }
  0x10   : > { %s188_s21 = scalar_lea.vmem (!%p162_p10), [#allocation2], %s404_s19  ;;  %s415_s26 = sshll.u32 (!%p162_p10), %s546_s15, 9 }
  0x11   : > { %s320_s23 = sshll.u32 (!%p162_p10), %s188_s21, 4  ;;  %s558_s4 = smov (!%p162_p10), [#allocation2]   ;;  %s655_s23 = int_to_ptr.vmem [resolvable:$true] %s320_s23 }
  0x12   : > { %s478_s30 = scalar_lea.vmem (!%p162_p10), %s655_s23, 512 }
  0x13   : > { %p479_p12 = scmp.ne.s32.totalorder (!%p162_p10), %s655_s23, %s478_s30 }
  0x14   : > { %v556_v0 = vmov 0.0   ;;  %v204_v1 = vld [vmem:[%s708_s1] sm:$0xff]  ;;  %s191_s28 = scalar_select %p190_p11, %s546_s15, 1  ;;  %v557_v2 = vmov 0   ;;  %vm216_vm0 = vcmask 64512   ;;  %v201_v6 = vld [vmem:[%s707_s0 + $0x8] sm:$0xff] }
  0x15   : > { %287 = vmatprep.mubr.f32.mxu0 %v556_v0  ;;  %293 = vmatprep.mubr.f32.mxu1 %v556_v0  ;;  %v200_v3 = vld [vmem:[%s707_s0] sm:$0xff]  ;;  %v205_v7 = vld [vmem:[%s708_s1 + $0x8] sm:$0xff]  ;;  %s662_s15 = scalar_lea.sflag [#allocation3], %s186_s18  ;;  %p480_p13 = pnand %p479_p12, %p621_p4 }
  0x16   : > { %477 = vset.pattern.permute.xlu0 %v557_v2  ;;  %s414_s29 = sshll.u32 %s191_s28, 4 }
  0x17   : > { %208 = vperm.xlu0 %477, %v204_v1   ;;  %s197_s5 = scalar_lea.vmem %s709_s2, %s414_s29  ;;  %s660_s29 = scalar_lea.hbm %s710_s3, %s415_s26 }
  0x18   : > { %v203_v4 = vld [vmem:[%s197_s5 + $0x8] sm:$0xff]  ;;  %v202_v5 = vld [vmem:[%s197_s5] sm:$0xff]  ;;  %p481_p0 = pneg %p480_p13  ;;  %s482_s5 = sshll.u32 %s558_s4, 4  ;;  %s483_s5 = int_to_ptr.vmem [resolvable:$false] %s482_s5 }
  0x19   : > { %253 = vmatprep.subr.mxu0 %v203_v4  ;;  %416 = vmatprep.subr.mxu1 %v203_v4  ;;  %s484_s6 = scalar_lea.vmem %s483_s5, 1024  ;;  %p485_p1 = scmp.lt.s32.totalorder %s655_s23, %s483_s5 }
  0x1a   : > { %254 = vmatpush1.msra.mxu0 %v202_v5  ;;  %417 = vmatpush1.msra.mxu1 %v202_v5  ;;  %p486_p2 = scmp.lt.s32.totalorder %s484_s6, %s478_s30 }
  0x1b   : > { %407 = vmatmul.mubr.msk.f32.vlgmr.msra.gmra.mxu0 %vm216_vm0, %v200_v3  ;;  %408 = vmatmul.mubr.msk.f32.vlgmr.msra.gmra.mxu1 %vm216_vm0, %v201_v6 }
  0x1c   : > { %213 = vperm.xlu0 %477, %v205_v7   ;;  %p487_p3 = por %p486_p2, %p485_p1 }
  0x1e   : > { %p488_p5 = pnand %p487_p3, %p481_p0 }
  0x92   : > { %v209_v8 = vpop.permute.xlu0 %208 }
  0x97   : > { %v214_v9 = vpop.permute.xlu0 %213 }
  0xdb   : > { %v289_v10 = vpop.f32.mrf.mxu0  ;;  %v295_v11 = vpop.f32.mrf.mxu1 }
  0xdc   : > { %v290_v12 = vadd.f32 %v289_v10, %v209_v8  ;;  %v296_v13 = vadd.f32 %v295_v11, %v214_v9 }
  0xdd   : > { %v291_v14 = vpop.f32.mrf.mxu0  ;;  %v297_v15 = vpop.f32.mrf.mxu1 }
  0xde   : > { %300 = vst [vmem:[%s188_s21] sm:$0xff] %v290_v12  ;;  %302 = vst [vmem:[%s188_s21 + $0x10] sm:$0xff] %v296_v13  ;;  %v292_v16 = vadd.f32 %v291_v14, %v209_v8  ;;  %v298_v17 = vadd.f32 %v297_v15, %v214_v9 }
  0xe0   : > { %301 = vst [vmem:[%s188_s21 + $0x8] sm:$0xff] %v292_v16  ;;  %303 = vst [vmem:[%s188_s21 + $0x18] sm:$0xff] %v298_v17 }
  0xe1   : > { %491 = shalt.err (!%p488_p5)
}
  0xe2   : > { %s492_s7 = scalar_lea.hbm %s660_s29, 512  ;;  %s496_s10 = scalar_lea.hbm %s710_s3, 1024 }
  0xe3   : > { %p493_p6 = scmp.ne.s32.totalorder %s660_s29, %s492_s7  ;;  %p497_p10 = scmp.lt.s32.totalorder %s660_s29, %s710_s3 }
  0xe4   : > { %p498_p11 = scmp.lt.s32.totalorder %s496_s10, %s492_s7 }
  0xe5   : > { %p494_p7 = pnand %p493_p6, %p621_p4 }
  0xe6   : > { %p499_p12 = por %p498_p11, %p497_p10 }
  0xe7   : > { %p495_p9 = pneg %p494_p7 }
  0xe9   : > { %p500_p13 = pnand %p499_p12, %p495_p9 }
  0xeb   : > { %503 = shalt.err (!%p500_p13)
}
  0xec   : > { %s559_s19 = smov 256   ;;  %s560_s21 = smov 16  }
  0xed   : > { %418 = dma.vmem_to_hbm [thread:$0]  (%p621_p4), %s655_s23, 512, %s660_s29, %s662_s15, %s559_s19, %s559_s19, %s560_s21  }
  0xee PF: > { %p424_p0 = scmp.ge.s32.totalorder %s554_s17, 2  ;;  %s335_s26 = sand.u32 1, %s534_s12  }
  0xef   : > { %s336_s27 = scalar_lea.sflag [#allocation3], %s335_s26 }
  0xf0   : > { %p421_p1 = pnand %p424_p0, %p628_p8 }
  0xf2   : > { %p422_p2 = pneg %p421_p1 }
  0xf4   : > { %529 = dma.done.wait (%p422_p2), %s336_s27, 512  }
  0xf5   : > { %531 = vsyncadd (%p422_p2), %s336_s27, 4294966784  ;;  %s16_s17 = sadd.s32 1, %s554_s17   ;;  %s713_s12 = smov %s538_s13 }
  0xf6   : > { %p13_p3 = scmp.ge.s32.totalorder %s16_s17, 4   ;;  %s714_s13 = smov %s542_s14 }
  0xf7   : > { %s715_s14 = smov %s634_s25  ;;  %s716_s15 = smov %s550_s16 }
  0xf8   : > { %s717_s16 = smov %s719_s20  ;;  %15 = sbr.rel (!%p13_p3) target bundleno = 4 (0x4), region = 67 }
  0xfd   :  { %341 = vsyncpa [#allocation3], 1 }
  0xfe   :  { %343 = vsyncpa [#allocation3 + $0x1], 1 }

</bundles_post_ra>
